<compile_context>
chip_gen: v7x
topology: tpu7x:2x2x1
jax: 0.10.0
libtpu: 0.0.40
codegen_flags: <defaults>
</compile_context>

<pallas_src>
import functools

import jax
import jax.numpy as jnp
from jax.experimental import pallas as pl
from jax.experimental.pallas import tpu as pltpu

EPS = 1e-5


def _round_up(a, m):
    return (a + m - 1) // m * m


def _pick_row_tile(n_rows, hw_padded):
    """Row-tile size: multiple of 8 sublanes, bounded by a ~2 MiB x-block budget
    (fits comfortably in v7x's 32 MiB scoped VMEM with double-buffered in+out),
    and small enough to give >= ~8 grid steps when the problem allows."""
    budget_rows = max(8, ((2 << 20) // (hw_padded * 4)) // 8 * 8)
    steps_rows = max(8, _round_up(pl.cdiv(n_rows, 8), 8))
    return min(_round_up(n_rows, 8), budget_rows, steps_rows)


# ---------------------------------------------------------------------------
# Pallas kernel: instance norm over spatial dim + class-conditional affine
# ---------------------------------------------------------------------------
def _cin_kernel(x_ref, g_ref, b_ref, o_ref, *, row_tile, inv_hw):
    r0 = pl.multiple_of(pl.program_id(0) * row_tile, row_tile)
    x = x_ref[...]                                        # (row_tile, HWp)
    # Single-pass biased mean/var: padded zero lanes contribute 0 to both sums,
    # and we divide by the true H*W, so padding does not corrupt the stats.
    s = jnp.sum(x, axis=-1, keepdims=True)                # (row_tile, 1)
    ss = jnp.sum(x * x, axis=-1, keepdims=True)
    mean = s * inv_hw
    var = jnp.maximum(ss * inv_hw - mean * mean, 0.0)
    rstd = jax.lax.rsqrt(var + EPS)
    g = g_ref[pl.ds(r0, row_tile), :]                     # (row_tile, 1), VMEM-resident
    b = b_ref[pl.ds(r0, row_tile), :]
    o_ref[...] = (x - mean) * (rstd * g) + b


def cin_pallas(x_rows, gamma, beta):
    """x_rows: (R, HW) f32; gamma, beta: (R, 1) f32.  Returns (R, HW) f32."""
    R, HW = x_rows.shape
    HWp = _round_up(HW, 128)                              # lane-dense output tiles
    row_tile = _pick_row_tile(R, HWp)
    Rp = _round_up(R, row_tile)

    if Rp != R or HWp != HW:
        x_rows = jnp.pad(x_rows, ((0, Rp - R), (0, HWp - HW)))
    if Rp != R:
        gamma = jnp.pad(gamma, ((0, Rp - R), (0, 0)))
        beta = jnp.pad(beta, ((0, Rp - R), (0, 0)))

    kernel = functools.partial(_cin_kernel, row_tile=row_tile, inv_hw=1.0 / float(HW))

    cost = pl.CostEstimate(
        flops=6 * Rp * HWp,
        transcendentals=Rp,
        bytes_accessed=2 * Rp * HWp * 4 + 4 * Rp * 4,
    )

    out = pl.pallas_call(
        kernel,
        out_shape=jax.ShapeDtypeStruct((Rp, HWp), jnp.float32),
        grid_spec=pltpu.PrefetchScalarGridSpec(
            num_scalar_prefetch=0,
            grid=(Rp // row_tile,),
            in_specs=[
                pl.BlockSpec((row_tile, HWp), lambda r: (r, 0)),
                pl.BlockSpec((Rp, 1), lambda r: (0, 0)),   # gamma: resident, DMA'd once
                pl.BlockSpec((Rp, 1), lambda r: (0, 0)),   # beta : resident, DMA'd once
            ],
            out_specs=pl.BlockSpec((row_tile, HWp), lambda r: (r, 0)),
        ),
        compiler_params=pltpu.CompilerParams(dimension_semantics=("parallel",)),
        cost_estimate=cost,
    )(x_rows, gamma, beta)

    if Rp != R or HWp != HW:
        out = out[:R, :HW]
    return out


# ---------------------------------------------------------------------------
# Module wrapper (parameter setup + tiny MLP glue in plain JAX)
# ---------------------------------------------------------------------------
def init_params(key, num_features, num_classes):
    C = num_features
    F2 = 2 * C
    k_embed, k_w1, k_w2 = jax.random.split(key, 3)
    # embed.weight[:, :C] ~ N(1, 0.02), embed.weight[:, C:] = 0
    embed_gamma = 1.0 + 0.02 * jax.random.normal(k_embed, (num_classes, C), jnp.float32)
    embed_beta = jnp.zeros((num_classes, C), jnp.float32)
    embed_w = jnp.concatenate([embed_gamma, embed_beta], axis=1)          # (num_classes, 2C)
    # Linear weights: xavier_uniform (fan_in = fan_out = 2C), bias = 0.1
    bound = (6.0 / (F2 + F2)) ** 0.5
    w1 = jax.random.uniform(k_w1, (F2, F2), jnp.float32, -bound, bound)   # stored (in, out)
    w2 = jax.random.uniform(k_w2, (F2, F2), jnp.float32, -bound, bound)
    b1 = jnp.full((1, F2), 0.1, jnp.float32)
    b2 = jnp.full((1, F2), 0.1, jnp.float32)
    return dict(embed_w=embed_w, w1=w1, b1=b1, w2=w2, b2=b2)


def class_conditional_instance_norm2d(params, x, y, cin_affine=True):
    # x: (B, C, H, W) float32, y: (B,) int32 class indices
    B, C, H, W = x.shape
    R = B * C
    x_rows = x.reshape(R, H * W)

    if cin_affine:
        # Tiny conditioning MLP: embedding gather + two (B, 2C) x (2C, 2C) matmuls.
        # Kept in plain JAX (XLA) — far cheaper than a second Pallas launch.
        e = params["embed_w"][y]                                          # (B, 2C)
        h = jnp.maximum(e @ params["w1"] + params["b1"], 0.0)
        gb = h @ params["w2"] + params["b2"]
        gamma = gb[:, :C].reshape(R, 1)
        beta = gb[:, C:].reshape(R, 1)
    else:
        gamma = jnp.ones((R, 1), jnp.float32)
        beta = jnp.zeros((R, 1), jnp.float32)

    out = cin_pallas(x_rows, gamma, beta)
    return out.reshape(B, C, H, W)


# ---------------------------------------------------------------------------
# Pure-JAX reference for validation
# ---------------------------------------------------------------------------
def reference_forward(params, x, y):
    B, C, H, W = x.shape
    e = params["embed_w"][y]
    h = jnp.maximum(e @ params["w1"] + params["b1"], 0.0)
    gb = h @ params["w2"] + params["b2"]
    gamma, beta = gb[:, :C], gb[:, C:]
    mean = x.mean(axis=(2, 3), keepdims=True)
    var = x.var(axis=(2, 3), keepdims=True)  # biased, as in nn.InstanceNorm2d
    xn = (x - mean) / jnp.sqrt(var + EPS)
    return gamma[:, :, None, None] * xn + beta[:, :, None, None]


if __name__ == "__main__":
    B, C, H, W = 2, 4, 16, 16
    num_classes = 10

    key = jax.random.PRNGKey(0)
    k_param, k_x, k_y = jax.random.split(key, 3)
    params = init_params(k_param, num_features=C, num_classes=num_classes)

    x = jax.random.normal(k_x, (B, C, H, W), jnp.float32)
    y = jax.random.randint(k_y, (B,), 0, num_classes, jnp.int32)

    fwd = jax.jit(class_conditional_instance_norm2d)
    out = jax.block_until_ready(fwd(params, x, y))

    ref = jax.block_until_ready(reference_forward(params, x, y))
    if not jnp.allclose(out, ref, rtol=1e-4, atol=1e-4):
        raise AssertionError("Pallas output does not match reference")

    print("KERNEL_OK")
</pallas_src>

<mosaic_0001>
module attributes {stable_mosaic.version = 11 : i64} {
  func.func @_cin_kernel(%arg0: i32, %arg1: memref<8x256xf32, #tpu.memory_space<vmem>>, %arg2: memref<8x1xf32, #tpu.memory_space<vmem>>, %arg3: memref<8x1xf32, #tpu.memory_space<vmem>>, %arg4: memref<8x256xf32, #tpu.memory_space<vmem>>) attributes {dimension_semantics = [#tpu.dimension_semantics<parallel>], iteration_bounds = array<i64: 1>, scalar_prefetch = 0 : i64, scratch_operands = 0 : i64, tpu.core_type = #tpu.core_type<tc>, window_params = [{transform_indices = @transform_0, window_bounds = array<i64: 8, 256>}, {pipeline_mode = #tpu.pipeline_mode<synchronous>, transform_indices = @transform_1, window_bounds = array<i64: 8, 1>}, {pipeline_mode = #tpu.pipeline_mode<synchronous>, transform_indices = @transform_2, window_bounds = array<i64: 8, 1>}, {transform_indices = @transform_3, window_bounds = array<i64: 8, 256>}]} {
    %c8_i32 = arith.constant 8 : i32
    %0 = arith.muli %arg0, %c8_i32 : i32
    %1 = tpu.assume_multiple %0, 8 : i32
    %c0 = arith.constant 0 : index
    %c0_0 = arith.constant 0 : index
    %2 = vector.load %arg1[%c0, %c0_0] : memref<8x256xf32, #tpu.memory_space<vmem>>, vector<8x256xf32>
    %cst = arith.constant dense<0.000000e+00> : vector<8xf32>
    %3 = vector.multi_reduction <add>, %2, %cst [1] : vector<8x256xf32> to vector<8xf32>
    %4 = vector.shape_cast %3 : vector<8xf32> to vector<8x1xf32>
    %5 = arith.mulf %2, %2 : vector<8x256xf32>
    %cst_1 = arith.constant dense<0.000000e+00> : vector<8xf32>
    %6 = vector.multi_reduction <add>, %5, %cst_1 [1] : vector<8x256xf32> to vector<8xf32>
    %7 = vector.shape_cast %6 : vector<8xf32> to vector<8x1xf32>
    %cst_2 = arith.constant 3.906250e-03 : f32
    %8 = vector.broadcast %cst_2 : f32 to vector<8x1xf32>
    %9 = arith.mulf %4, %8 : vector<8x1xf32>
    %cst_3 = arith.constant 3.906250e-03 : f32
    %10 = vector.broadcast %cst_3 : f32 to vector<8x1xf32>
    %11 = arith.mulf %7, %10 : vector<8x1xf32>
    %12 = arith.mulf %9, %9 : vector<8x1xf32>
    %13 = arith.subf %11, %12 : vector<8x1xf32>
    %cst_4 = arith.constant 0.000000e+00 : f32
    %14 = vector.broadcast %cst_4 : f32 to vector<8x1xf32>
    %15 = arith.maximumf %13, %14 : vector<8x1xf32>
    %cst_5 = arith.constant 9.99999974E-6 : f32
    %16 = vector.broadcast %cst_5 : f32 to vector<8x1xf32>
    %17 = arith.addf %15, %16 : vector<8x1xf32>
    %18 = math.rsqrt %17 : vector<8x1xf32>
    %19 = arith.index_cast %1 : i32 to index
    %c0_6 = arith.constant 0 : index
    %20 = vector.load %arg2[%19, %c0_6] : memref<8x1xf32, #tpu.memory_space<vmem>>, vector<8x1xf32>
    %21 = arith.index_cast %1 : i32 to index
    %c0_7 = arith.constant 0 : index
    %22 = vector.load %arg3[%21, %c0_7] : memref<8x1xf32, #tpu.memory_space<vmem>>, vector<8x1xf32>
    %23 = vector.broadcast %9 : vector<8x1xf32> to vector<8x256xf32>
    %24 = arith.subf %2, %23 : vector<8x256xf32>
    %25 = arith.mulf %18, %20 : vector<8x1xf32>
    %26 = vector.broadcast %25 : vector<8x1xf32> to vector<8x256xf32>
    %27 = arith.mulf %24, %26 : vector<8x256xf32>
    %28 = vector.broadcast %22 : vector<8x1xf32> to vector<8x256xf32>
    %29 = arith.addf %27, %28 : vector<8x256xf32>
    %c0_8 = arith.constant 0 : index
    %c0_9 = arith.constant 0 : index
    %30 = vector.load %arg4[%c0_8, %c0_9] : memref<8x256xf32, #tpu.memory_space<vmem>>, vector<8x256xf32>
    tpu.vector_store %arg4[%c0_8, %c0_9], %29 {strides = array<i32>} : memref<8x256xf32, #tpu.memory_space<vmem>>, vector<8x256xf32>,
    return
  }
  func.func @transform_0(%arg0: i32) -> (i32, i32) {
    %c0_i32 = arith.constant 0 : i32
    %c0_i32_0 = arith.constant 0 : i32
    return %arg0, %c0_i32 : i32, i32
  }
  func.func @transform_1(%arg0: i32) -> (i32, i32) {
    %c0_i32 = arith.constant 0 : i32
    %c0_i32_0 = arith.constant 0 : i32
    %c0_i32_1 = arith.constant 0 : i32
    return %c0_i32, %c0_i32_0 : i32, i32
  }
  func.func @transform_2(%arg0: i32) -> (i32, i32) {
    %c0_i32 = arith.constant 0 : i32
    %c0_i32_0 = arith.constant 0 : i32
    %c0_i32_1 = arith.constant 0 : i32
    return %c0_i32, %c0_i32_0 : i32, i32
  }
  func.func @transform_3(%arg0: i32) -> (i32, i32) {
    %c0_i32 = arith.constant 0 : i32
    %c0_i32_0 = arith.constant 0 : i32
    return %arg0, %c0_i32 : i32, i32
  }
}

</mosaic_0001>

<bundles_post_ra>
// kernel: class_conditional_instance_norm2d.1
= control target key start
LH: loop header
LB: loop body
LE: loop exit
PB: predicated region body
PF: predicated region fallthrough
CT: control target
= control target key end

     0   :  { %v64_v6 = vmov 0   ;;  %s103_s0 = inlined_call_operand.vmem [shape: f32[8,256], index: 0, kind: input, shape index: {}]   ;;  %s104_s1 = inlined_call_operand.vmem [shape: f32[8,1], index: 1, kind: input, shape index: {}]   ;;  %s105_s2 = inlined_call_operand.vmem [shape: f32[8,1], index: 2, kind: input, shape index: {}]   ;;  %s106_s3 = inlined_call_operand.vmem [shape: f32[8,256], index: 3, kind: output, shape index: {}]  }
   0x1   :  { %v15_v0 = vld [vmem:[%s103_s0] sm:$0xff]  ;;  %v16_v1 = vld [vmem:[%s103_s0 + $0x8] sm:$0xff]  ;;  %60 = vset.pattern.permute.xlu1 %v64_v6  ;;  %61 = vset.pattern.permute.xlu0 %v64_v6 }
   0x2   :  { %v17_v2 = vadd.f32 %v16_v1, %v15_v0  ;;  %v20_v3 = vmul.f32 %v15_v0, %v15_v0  ;;  %v21_v4 = vmul.f32 %v16_v1, %v16_v1  ;;  %v33_v15 = vld [vmem:[%s104_s1] sm:$0xff] }
   0x3   :  { %v35_v18 = vld [vmem:[%s105_s2] sm:$0xff] }
   0x4   :  { %18 = vadd.xlane.f32.xlu0 %v17_v2  ;;  %v22_v5 = vadd.f32 %v21_v4, %v20_v3 }
   0x8   :  { %23 = vadd.xlane.f32.xlu0 %v22_v5 }
  0x91   :  { %v19_v7 = vpop.xlane.xlu0 %18 }
  0x92   :  { %v25_v8 = vmul.f32 0.00390625, %v19_v7 }
  0x94   :  { %v27_v10 = vmul.f32 %v25_v8, %v25_v8  ;;  %v36_v20 = vsub.f32 %v15_v0, %v25_v8  ;;  %v37_v21 = vsub.f32 %v16_v1, %v25_v8 }
  0x95   :  { %v24_v9 = vpop.xlane.xlu0 %23 }
  0x96   :  { %v26_v11 = vmul.f32 0.00390625, %v24_v9 }
  0x98   :  { %v28_v12 = vsub.f32 %v26_v11, %v27_v10 }
  0x9a   :  { %v29_v13 = vmax.f32 %v28_v12, 0.0 }
  0x9c   :  { %v30_v14 = vadd.f32 1e-05, %v29_v13 }
  0x9e   :  { %62 = vrsqrt.f32 %v30_v14 }
  0xa8   :  { %v63_v16 = vpop.eup %62 }
  0xa9   :  { %v38_v17 = vmul.f32 %v63_v16, %v33_v15 }
  0xab   :  { %41 = vperm.xlu1 %60, %v38_v17  }
  0xaf   :  { %48 = vperm.xlu1 %60, %v35_v18  }
 0x12a   :  { %v42_v19 = vpop.permute.xlu1 %41 }
 0x12b   :  { %v44_v22 = vmul.f32 %v42_v19, %v36_v20  ;;  %v45_v23 = vmul.f32 %v42_v19, %v37_v21 }
 0x12e   :  { %v49_v24 = vpop.permute.xlu1 %48 }
 0x12f   :  { %v51_v25 = vadd.f32 %v49_v24, %v44_v22  ;;  %v52_v26 = vadd.f32 %v49_v24, %v45_v23 }
 0x131   :  { %53 = vst [vmem:[%s106_s3] sm:$0xff] %v51_v25  ;;  %54 = vst [vmem:[%s106_s3 + $0x8] sm:$0xff] %v52_v26 }

</bundles_post_ra>
